<compile_context>
chip_gen: v7x
topology: tpu7x:2x2x1
jax: 0.10.0
libtpu: 0.0.40
codegen_flags: <defaults>
</compile_context>

<pallas_src>
import jax
import jax.numpy as jnp
from jax.experimental import pallas as pl
from jax.experimental.pallas import tpu as pltpu


# HBM->HBM slabs cost no VMEM, so they can be large; 16 MiB per grid step
# amortizes the ~0.35 us per-step overhead on every generation.
_TARGET_SLAB_BYTES = 16 * 1024 * 1024
_MIN_SLABS = 2          # keep both v7x TensorCores busy when rows allow it
_MAX_INFLIGHT = 4       # concurrent DMAs per grid step (2-4 recommended)


def _cdiv(a: int, b: int) -> int:
    return -(-a // b)


def _round_up(v: int, m: int) -> int:
    return ((v + m - 1) // m) * m


def _partition(total: int, parts: int):
    """Split `total` rows into <= `parts` contiguous (offset, size) chunks."""
    parts = max(1, min(parts, total))
    base, rem = divmod(total, parts)
    chunks, off = [], 0
    for j in range(parts):
        sz = base + (1 if j < rem else 0)
        if sz > 0:
            chunks.append((off, sz))
            off += sz
    return chunks


def _make_hbm_copy_kernel(rows: int, slab_rows: int, chunks):
    """Kernel copying one `slab_rows`-row slab per grid step, HBM->HBM."""

    def kernel(x_hbm, o_hbm, sem):
        i = pl.program_id(0)
        # Clamp so the (possibly ragged) last slab re-covers the tail instead
        # of running out of bounds; the overlapped rows are rewritten with
        # identical bytes, so the result is exact regardless of step order.
        start = jnp.minimum(i * slab_rows, rows - slab_rows)
        copies = []
        for j, (off, sz) in enumerate(chunks):
            cp = pltpu.make_async_copy(
                x_hbm.at[pl.ds(start + off, sz)],
                o_hbm.at[pl.ds(start + off, sz)],
                sem.at[j],
            )
            cp.start()
            copies.append(cp)
        for cp in copies:
            cp.wait()

    return kernel


def _materialized_identity(x: jax.Array) -> jax.Array:
    """Fresh-buffer identity: tiled HBM->HBM DMA copy (no VMEM staging)."""
    orig_shape = x.shape
    # Collapse leading dims only (layout-compatible, no data movement); keep
    # the original last dim so we never slice the minor axis.
    x2 = x.reshape(1, -1) if x.ndim <= 1 else x.reshape(-1, orig_shape[-1])
    rows, d = x2.shape

    row_bytes = d * jnp.dtype(x2.dtype).itemsize
    total_bytes = rows * row_bytes

    n_slabs = max(_MIN_SLABS, _cdiv(total_bytes, _TARGET_SLAB_BYTES))
    slab_rows = _cdiv(rows, n_slabs)
    # Prefer sublane-aligned slab starts (perf only); never exceed `rows`.
    slab_rows = max(1, min(_round_up(slab_rows, 8), rows))
    chunks = _partition(slab_rows, _MAX_INFLIGHT)
    grid = (_cdiv(rows, slab_rows),)

    out2 = pl.pallas_call(
        _make_hbm_copy_kernel(rows, slab_rows, chunks),
        out_shape=jax.ShapeDtypeStruct((rows, d), x2.dtype),
        grid_spec=pltpu.PrefetchScalarGridSpec(
            num_scalar_prefetch=0,
            grid=grid,
            in_specs=[pl.BlockSpec(memory_space=pl.ANY)],
            out_specs=pl.BlockSpec(memory_space=pl.ANY),
            scratch_shapes=[pltpu.SemaphoreType.DMA((len(chunks),))],
        ),
        compiler_params=pltpu.CompilerParams(
            dimension_semantics=("parallel",),
            has_side_effects=True,
        ),
    )(x2)

    return out2.reshape(orig_shape)


def identity_map(x: jax.Array, *args, materialize: bool = False,
                 donate: bool = False, **kwargs) -> jax.Array:
    """Pallas implementation of IdentityMap.forward.

    Default (and donate=True): returns x unchanged — exactly `return x`,
    no kernel launch, zero HBM traffic.  Set materialize=True only when a
    freshly materialized copy is required; that path runs the HBM->HBM DMA
    copy kernel.
    """
    if not materialize or donate:
        return x
    if x.ndim == 0 or x.size == 0:
        return x
    return _materialized_identity(x)


# config property of the module (metadata only, no compute)
IDENTITY_MAP_CONFIG = {"mm_projector_type": "identity"}


if __name__ == "__main__":
    key = jax.random.PRNGKey(0)
    # Small shape consistent with a multimodal projector input: [B, S, D]
    B, S, D = 2, 8, 32
    x = jax.random.normal(key, (B, S, D), dtype=jnp.float32)

    # Fast path (the module's real semantics): no kernel, no HBM round-trip.
    y_fast = identity_map(x)
    jax.block_until_ready(y_fast)
    assert y_fast.shape == x.shape and y_fast.dtype == x.dtype
    assert bool(jnp.all(y_fast == x))

    # Materialized Pallas HBM->HBM DMA copy path.
    y_copy = identity_map(x, materialize=True)
    jax.block_until_ready(y_copy)
    assert y_copy.shape == x.shape and y_copy.dtype == x.dtype
    assert bool(jnp.all(y_copy == x))

    # Unaligned row count + bf16 (ragged last slab handled by clamped start,
    # no pad / slice passes).
    x_bf = jax.random.normal(jax.random.PRNGKey(0), (2, 7, 32)).astype(jnp.bfloat16)
    y_bf = identity_map(x_bf, materialize=True)
    jax.block_until_ready(y_bf)
    assert y_bf.shape == x_bf.shape and y_bf.dtype == x_bf.dtype
    assert bool(jnp.all(y_bf == x_bf))

    # donate short-circuit: a donated identity is a no-op.
    y_don = identity_map(x, materialize=True, donate=True)
    assert y_don is x

    print("KERNEL_OK")
</pallas_src>

<mosaic_0001>
module attributes {stable_mosaic.version = 11 : i64} {
  func.func @kernel(%arg0: i32, %arg1: memref<16x32xf32, #tpu.memory_space<any>>, %arg2: memref<16x32xf32, #tpu.memory_space<any>>, %arg3: memref<4x!tpu.dma_semaphore, #tpu.memory_space<semaphore_mem>>) attributes {dimension_semantics = [#tpu.dimension_semantics<parallel>], iteration_bounds = array<i64: 2>, scalar_prefetch = 0 : i64, scratch_operands = 1 : i64, tpu.core_type = #tpu.core_type<tc>, window_params = [{}, {}]} {
    %c8_i32 = arith.constant 8 : i32
    %0 = arith.muli %arg0, %c8_i32 : i32
    %c8_i32_0 = arith.constant 8 : i32
    %1 = arith.minsi %0, %c8_i32_0 : i32
    %c0_i32 = arith.constant 0 : i32
    %2 = arith.addi %1, %c0_i32 : i32
    %c0_i32_1 = arith.constant 0 : i32
    %3 = arith.addi %1, %c0_i32_1 : i32
    %c0_i32_2 = arith.constant 0 : i32
    %c0_i32_3 = arith.constant 0 : i32
    %4 = tpu.memref_slice %arg1[%2, %c0_i32_3] : memref<16x32xf32, #tpu.memory_space<any>> -> memref<2x32xf32, #tpu.memory_space<any>>
    %c0_i32_4 = arith.constant 0 : i32
    %5 = tpu.memref_slice %arg2[%3, %c0_i32_4] : memref<16x32xf32, #tpu.memory_space<any>> -> memref<2x32xf32, #tpu.memory_space<any>>
    %6 = tpu.memref_slice %arg3[%c0_i32_2] : memref<4x!tpu.dma_semaphore, #tpu.memory_space<semaphore_mem>> -> memref<1x!tpu.dma_semaphore, #tpu.memory_space<semaphore_mem>>
    %7 = tpu.memref_squeeze %6 : memref<1x!tpu.dma_semaphore, #tpu.memory_space<semaphore_mem>> -> memref<!tpu.dma_semaphore, #tpu.memory_space<semaphore_mem>>
    tpu.enqueue_dma source(%4 : memref<2x32xf32, #tpu.memory_space<any>>) target(%5 : memref<2x32xf32, #tpu.memory_space<any>>) target_semaphore(%7 : memref<!tpu.dma_semaphore, #tpu.memory_space<semaphore_mem>>)
    %c2_i32 = arith.constant 2 : i32
    %8 = arith.addi %1, %c2_i32 : i32
    %c2_i32_5 = arith.constant 2 : i32
    %9 = arith.addi %1, %c2_i32_5 : i32
    %c1_i32 = arith.constant 1 : i32
    %c0_i32_6 = arith.constant 0 : i32
    %10 = tpu.memref_slice %arg1[%8, %c0_i32_6] : memref<16x32xf32, #tpu.memory_space<any>> -> memref<2x32xf32, #tpu.memory_space<any>>
    %c0_i32_7 = arith.constant 0 : i32
    %11 = tpu.memref_slice %arg2[%9, %c0_i32_7] : memref<16x32xf32, #tpu.memory_space<any>> -> memref<2x32xf32, #tpu.memory_space<any>>
    %12 = tpu.memref_slice %arg3[%c1_i32] : memref<4x!tpu.dma_semaphore, #tpu.memory_space<semaphore_mem>> -> memref<1x!tpu.dma_semaphore, #tpu.memory_space<semaphore_mem>>
    %13 = tpu.memref_squeeze %12 : memref<1x!tpu.dma_semaphore, #tpu.memory_space<semaphore_mem>> -> memref<!tpu.dma_semaphore, #tpu.memory_space<semaphore_mem>>
    tpu.enqueue_dma source(%10 : memref<2x32xf32, #tpu.memory_space<any>>) target(%11 : memref<2x32xf32, #tpu.memory_space<any>>) target_semaphore(%13 : memref<!tpu.dma_semaphore, #tpu.memory_space<semaphore_mem>>)
    %c4_i32 = arith.constant 4 : i32
    %14 = arith.addi %1, %c4_i32 : i32
    %c4_i32_8 = arith.constant 4 : i32
    %15 = arith.addi %1, %c4_i32_8 : i32
    %c2_i32_9 = arith.constant 2 : i32
    %c0_i32_10 = arith.constant 0 : i32
    %16 = tpu.memref_slice %arg1[%14, %c0_i32_10] : memref<16x32xf32, #tpu.memory_space<any>> -> memref<2x32xf32, #tpu.memory_space<any>>
    %c0_i32_11 = arith.constant 0 : i32
    %17 = tpu.memref_slice %arg2[%15, %c0_i32_11] : memref<16x32xf32, #tpu.memory_space<any>> -> memref<2x32xf32, #tpu.memory_space<any>>
    %18 = tpu.memref_slice %arg3[%c2_i32_9] : memref<4x!tpu.dma_semaphore, #tpu.memory_space<semaphore_mem>> -> memref<1x!tpu.dma_semaphore, #tpu.memory_space<semaphore_mem>>
    %19 = tpu.memref_squeeze %18 : memref<1x!tpu.dma_semaphore, #tpu.memory_space<semaphore_mem>> -> memref<!tpu.dma_semaphore, #tpu.memory_space<semaphore_mem>>
    tpu.enqueue_dma source(%16 : memref<2x32xf32, #tpu.memory_space<any>>) target(%17 : memref<2x32xf32, #tpu.memory_space<any>>) target_semaphore(%19 : memref<!tpu.dma_semaphore, #tpu.memory_space<semaphore_mem>>)
    %c6_i32 = arith.constant 6 : i32
    %20 = arith.addi %1, %c6_i32 : i32
    %c6_i32_12 = arith.constant 6 : i32
    %21 = arith.addi %1, %c6_i32_12 : i32
    %c3_i32 = arith.constant 3 : i32
    %c0_i32_13 = arith.constant 0 : i32
    %22 = tpu.memref_slice %arg1[%20, %c0_i32_13] : memref<16x32xf32, #tpu.memory_space<any>> -> memref<2x32xf32, #tpu.memory_space<any>>
    %c0_i32_14 = arith.constant 0 : i32
    %23 = tpu.memref_slice %arg2[%21, %c0_i32_14] : memref<16x32xf32, #tpu.memory_space<any>> -> memref<2x32xf32, #tpu.memory_space<any>>
    %24 = tpu.memref_slice %arg3[%c3_i32] : memref<4x!tpu.dma_semaphore, #tpu.memory_space<semaphore_mem>> -> memref<1x!tpu.dma_semaphore, #tpu.memory_space<semaphore_mem>>
    %25 = tpu.memref_squeeze %24 : memref<1x!tpu.dma_semaphore, #tpu.memory_space<semaphore_mem>> -> memref<!tpu.dma_semaphore, #tpu.memory_space<semaphore_mem>>
    tpu.enqueue_dma source(%22 : memref<2x32xf32, #tpu.memory_space<any>>) target(%23 : memref<2x32xf32, #tpu.memory_space<any>>) target_semaphore(%25 : memref<!tpu.dma_semaphore, #tpu.memory_space<semaphore_mem>>)
    %c0_i32_15 = arith.constant 0 : i32
    %c0_i32_16 = arith.constant 0 : i32
    %26 = tpu.memref_slice %arg1[%2, %c0_i32_16] : memref<16x32xf32, #tpu.memory_space<any>> -> memref<2x32xf32, #tpu.memory_space<any>>
    %c0_i32_17 = arith.constant 0 : i32
    %27 = tpu.memref_slice %arg2[%3, %c0_i32_17] : memref<16x32xf32, #tpu.memory_space<any>> -> memref<2x32xf32, #tpu.memory_space<any>>
    %28 = tpu.memref_slice %arg3[%c0_i32_15] : memref<4x!tpu.dma_semaphore, #tpu.memory_space<semaphore_mem>> -> memref<1x!tpu.dma_semaphore, #tpu.memory_space<semaphore_mem>>
    %29 = tpu.memref_squeeze %28 : memref<1x!tpu.dma_semaphore, #tpu.memory_space<semaphore_mem>> -> memref<!tpu.dma_semaphore, #tpu.memory_space<semaphore_mem>>
    tpu.wait_dma2 semaphore(%29 : memref<!tpu.dma_semaphore, #tpu.memory_space<semaphore_mem>>) src(%26 : memref<2x32xf32, #tpu.memory_space<any>>) dst(%27 : memref<2x32xf32, #tpu.memory_space<any>>)
    %c1_i32_18 = arith.constant 1 : i32
    %c0_i32_19 = arith.constant 0 : i32
    %30 = tpu.memref_slice %arg1[%8, %c0_i32_19] : memref<16x32xf32, #tpu.memory_space<any>> -> memref<2x32xf32, #tpu.memory_space<any>>
    %c0_i32_20 = arith.constant 0 : i32
    %31 = tpu.memref_slice %arg2[%9, %c0_i32_20] : memref<16x32xf32, #tpu.memory_space<any>> -> memref<2x32xf32, #tpu.memory_space<any>>
    %32 = tpu.memref_slice %arg3[%c1_i32_18] : memref<4x!tpu.dma_semaphore, #tpu.memory_space<semaphore_mem>> -> memref<1x!tpu.dma_semaphore, #tpu.memory_space<semaphore_mem>>
    %33 = tpu.memref_squeeze %32 : memref<1x!tpu.dma_semaphore, #tpu.memory_space<semaphore_mem>> -> memref<!tpu.dma_semaphore, #tpu.memory_space<semaphore_mem>>
    tpu.wait_dma2 semaphore(%33 : memref<!tpu.dma_semaphore, #tpu.memory_space<semaphore_mem>>) src(%30 : memref<2x32xf32, #tpu.memory_space<any>>) dst(%31 : memref<2x32xf32, #tpu.memory_space<any>>)
    %c2_i32_21 = arith.constant 2 : i32
    %c0_i32_22 = arith.constant 0 : i32
    %34 = tpu.memref_slice %arg1[%14, %c0_i32_22] : memref<16x32xf32, #tpu.memory_space<any>> -> memref<2x32xf32, #tpu.memory_space<any>>
    %c0_i32_23 = arith.constant 0 : i32
    %35 = tpu.memref_slice %arg2[%15, %c0_i32_23] : memref<16x32xf32, #tpu.memory_space<any>> -> memref<2x32xf32, #tpu.memory_space<any>>
    %36 = tpu.memref_slice %arg3[%c2_i32_21] : memref<4x!tpu.dma_semaphore, #tpu.memory_space<semaphore_mem>> -> memref<1x!tpu.dma_semaphore, #tpu.memory_space<semaphore_mem>>
    %37 = tpu.memref_squeeze %36 : memref<1x!tpu.dma_semaphore, #tpu.memory_space<semaphore_mem>> -> memref<!tpu.dma_semaphore, #tpu.memory_space<semaphore_mem>>
    tpu.wait_dma2 semaphore(%37 : memref<!tpu.dma_semaphore, #tpu.memory_space<semaphore_mem>>) src(%34 : memref<2x32xf32, #tpu.memory_space<any>>) dst(%35 : memref<2x32xf32, #tpu.memory_space<any>>)
    %c3_i32_24 = arith.constant 3 : i32
    %c0_i32_25 = arith.constant 0 : i32
    %38 = tpu.memref_slice %arg1[%20, %c0_i32_25] : memref<16x32xf32, #tpu.memory_space<any>> -> memref<2x32xf32, #tpu.memory_space<any>>
    %c0_i32_26 = arith.constant 0 : i32
    %39 = tpu.memref_slice %arg2[%21, %c0_i32_26] : memref<16x32xf32, #tpu.memory_space<any>> -> memref<2x32xf32, #tpu.memory_space<any>>
    %40 = tpu.memref_slice %arg3[%c3_i32_24] : memref<4x!tpu.dma_semaphore, #tpu.memory_space<semaphore_mem>> -> memref<1x!tpu.dma_semaphore, #tpu.memory_space<semaphore_mem>>
    %41 = tpu.memref_squeeze %40 : memref<1x!tpu.dma_semaphore, #tpu.memory_space<semaphore_mem>> -> memref<!tpu.dma_semaphore, #tpu.memory_space<semaphore_mem>>
    tpu.wait_dma2 semaphore(%41 : memref<!tpu.dma_semaphore, #tpu.memory_space<semaphore_mem>>) src(%38 : memref<2x32xf32, #tpu.memory_space<any>>) dst(%39 : memref<2x32xf32, #tpu.memory_space<any>>)
    return
  }
}

</mosaic_0001>

<bundles_post_ra>
// kernel: tpu_custom_call.1
= control target key start
LH: loop header
LB: loop body
LE: loop exit
PB: predicated region body
PF: predicated region fallthrough
CT: control target
= control target key end

     0   :  { %s218_s6 = smov 0   ;;  %s233_s0 = inlined_call_operand.hbm [shape: f32[16,32], index: 0, kind: input, shape index: {}]   ;;  %s234_s1 = inlined_call_operand.hbm [shape: f32[16,32], index: 1, kind: output, shape index: {}]  }
   0x1 LB: > { %s153_s7 = sshll.u32 %s197_s6, 3  ;;  %s199_s15 = smov [#allocation2]   ;;  %s197_s6 = sphi %s218_s6, %s11_s6  }
   0x2   : > { %p14_p0 = scmp.lt.s32.totalorder %s153_s7, 8  ;;  %s200_s16 = smov [#allocation3]  }
   0x3   : > { %s201_s17 = smov 0   ;;  %s202_s20 = smov [#allocation2 + $0x1]  }
   0x4   : > { %s236_s7 = smov (!%p14_p0, %s153_s7), 8  ;;  %s203_s21 = smov [#allocation5]  }
   0x5   : > { %s154_s8 = sshll.u32 %s236_s7, 4  ;;  %s204_s24 = smov [#allocation2 + $0x2]  }
   0x6   : > { %s17_s11 = scalar_lea.hbm %s233_s0, %s154_s8  ;;  %s19_s14 = scalar_lea.hbm %s234_s1, %s154_s8 }
   0x7   : > { %32 = dma.general %s17_s11, 32, %s19_s14, %s199_s15, %s200_s16, [#allocation4], %s201_s17, 0  }
   0x8   : > { %s132_s18 = scalar_lea.hbm %s17_s11, 32  ;;  %s135_s19 = scalar_lea.hbm %s19_s14, 32 }
   0x9   : > { %51 = dma.general %s132_s18, 32, %s135_s19, %s202_s20, %s203_s21, [#allocation6], %s201_s17, 0  }
   0xa   : > { %s138_s22 = scalar_lea.hbm %s17_s11, 64  ;;  %s141_s23 = scalar_lea.hbm %s19_s14, 64 }
   0xb   : > { %s205_s25 = smov [#allocation7]   ;;  %s144_s26 = scalar_lea.hbm %s17_s11, 96 }
   0xc   : > { %70 = dma.general %s138_s22, 32, %s141_s23, %s204_s24, %s205_s25, [#allocation8], %s201_s17, 0  }
   0xd   : > { %s147_s27 = scalar_lea.hbm %s19_s14, 96  ;;  %s206_s28 = smov [#allocation2 + $0x3]  }
   0xe   : > { %s207_s29 = smov [#allocation9]  }
   0xf   : > { %89 = dma.general %s144_s26, 32, %s147_s27, %s206_s28, %s207_s29, [#allocation10], %s201_s17, 0  }
  0x10   : > { %187 = dma.done.wait [#allocation2], 32 }
  0x11   : > { %188 = vsyncadd [#allocation2], 4294967264 }
  0x12   : > { %189 = dma.done.wait [#allocation2 + $0x1], 32 }
  0x13   : > { %190 = vsyncadd [#allocation2 + $0x1], 4294967264 }
  0x14   : > { %191 = dma.done.wait [#allocation2 + $0x2], 32 }
  0x15   : > { %192 = vsyncadd [#allocation2 + $0x2], 4294967264 }
  0x16   : > { %193 = dma.done.wait [#allocation2 + $0x3], 32 }
  0x17   : > { %194 = vsyncadd [#allocation2 + $0x3], 4294967264  ;;  %s11_s6 = sadd.s32 1, %s197_s6  }
  0x18   : > { %p8_p1 = scmp.ge.s32.totalorder %s11_s6, 2  }
  0x1a   :  { %10 = sbr.rel (!%p8_p1) target bundleno = 1 (0x1), region = 33 }
  0x21   :  { %99 = vsyncmov [#allocation2] }
  0x24   :  { %s100_s30 = vpop.sfrf %99 }
  0x25   :  { %p162_p2 = scmp.ne.s32.totalorder %s100_s30, 0 }
  0x27   :  { %104 = shalt.err (%p162_p2)  }
  0x28   :  { %106 = vsyncmov [#allocation2 + $0x1] }
  0x2b   :  { %s107_s2 = vpop.sfrf %106 }
  0x2c   :  { %p163_p3 = scmp.ne.s32.totalorder %s107_s2, 0 }
  0x2e   :  { %111 = shalt.err (%p163_p3)  }
  0x2f   :  { %113 = vsyncmov [#allocation2 + $0x2] }
  0x32   :  { %s114_s3 = vpop.sfrf %113 }
  0x33   :  { %p164_p4 = scmp.ne.s32.totalorder %s114_s3, 0 }
  0x35   :  { %118 = shalt.err (%p164_p4)  }
  0x36   :  { %120 = vsyncmov [#allocation2 + $0x3] }
  0x39   :  { %s121_s4 = vpop.sfrf %120 }
  0x3a   :  { %p165_p5 = scmp.ne.s32.totalorder %s121_s4, 0 }
  0x3c   :  { %125 = shalt.err (%p165_p5)  }

</bundles_post_ra>
